<compile_context>
chip_gen: v7x
topology: tpu7x:2x2x1
jax: 0.10.0
libtpu: 0.0.40
codegen_flags: <defaults>
</compile_context>

<pallas_src>
import numpy as np
import jax
import jax.numpy as jnp
from jax.experimental import pallas as pl
from jax.experimental.pallas import tpu as pltpu


# ----------------------------------------------------------------------------
# Primary (recommended) forward: identity on the parameter, zero overhead.
# ----------------------------------------------------------------------------
def img_logscale_forward(log_scale: jax.Array) -> jax.Array:
    """Pallas-free equivalent of Img_logscale.forward(): returns log_scale.

    The forward pass is a pure parameter read; per the performance review the
    correct "kernel" is to not launch one at all.
    """
    return log_scale


# ----------------------------------------------------------------------------
# Optional kernel-boundary variant (kept only for framework symmetry).
# ----------------------------------------------------------------------------
def _logscale_kernel(log_scale_ref, out_ref):
    # Scalar copy on the SMEM path. With input_output_aliases the underlying
    # HBM buffer is shared, so this is effectively an alias, not a data move.
    out_ref[0] = log_scale_ref[0]


def img_logscale_forward_pallas(log_scale: jax.Array) -> jax.Array:
    """Kernel-boundary version of Img_logscale.forward().

    log_scale: shape (1,), float32. The aliased input is treated as donated;
    do not reuse the passed-in array after this call.
    """
    return pl.pallas_call(
        _logscale_kernel,
        out_shape=jax.ShapeDtypeStruct(log_scale.shape, log_scale.dtype),
        # Lone scalar belongs in SMEM: avoids a padded (8,128) VMEM tile and
        # the masked single-lane vector store the VMEM version would incur.
        in_specs=[pl.BlockSpec(memory_space=pltpu.MemorySpace.SMEM)],
        out_specs=pl.BlockSpec(memory_space=pltpu.MemorySpace.SMEM),
        # Output aliases the input parameter buffer: elides the copy-out.
        input_output_aliases={0: 0},
    )(log_scale)


def init_img_logscale_params(scale: float = 1.0) -> jax.Array:
    """Deterministic parameter init matching the PyTorch __init__."""
    return jnp.asarray(np.log(scale) * np.ones(1), dtype=jnp.float32)


if __name__ == "__main__":
    # Deterministic setup (PRNGKey(0) unused for the parameter itself since the
    # module's init is fully deterministic: log(scale) * ones(1)).
    _ = jax.random.PRNGKey(0)

    scale = 1.0
    expected = np.log(scale) * np.ones(1, dtype=np.float32)

    # --- Primary path: direct parameter return (no kernel launch). ---
    log_scale = init_img_logscale_params(scale)
    out = jax.block_until_ready(img_logscale_forward(log_scale))
    np.testing.assert_allclose(np.asarray(out), expected, rtol=0, atol=0)
    assert out.shape == (1,) and out.dtype == jnp.float32

    # --- Optional Pallas kernel-boundary path (aliased, SMEM scalar). ---
    # Use a fresh parameter copy since the aliased input is donated.
    log_scale_for_kernel = init_img_logscale_params(scale)
    out_k = jax.block_until_ready(img_logscale_forward_pallas(log_scale_for_kernel))
    np.testing.assert_allclose(np.asarray(out_k), expected, rtol=0, atol=0)
    assert out_k.shape == (1,) and out_k.dtype == jnp.float32

    print("KERNEL_OK")
</pallas_src>

<mosaic_0001>
module attributes {stable_mosaic.version = 11 : i64} {
  func.func @_logscale_kernel(%arg0: memref<1xf32, #tpu.memory_space<smem>>, %arg1: memref<1xf32, #tpu.memory_space<smem>>) attributes {dimension_semantics = [], scalar_prefetch = 0 : i64, scratch_operands = 0 : i64, tpu.core_type = #tpu.core_type<tc>} {
    %c0 = arith.constant 0 : index
    %0 = memref.load %arg0[%c0] : memref<1xf32, #tpu.memory_space<smem>>
    %c0_0 = arith.constant 0 : index
    %1 = memref.load %arg1[%c0_0] : memref<1xf32, #tpu.memory_space<smem>>
    memref.store %0, %arg1[%c0_0] : memref<1xf32, #tpu.memory_space<smem>>
    return
  }
}

</mosaic_0001>

<bundles_post_ra>
// kernel: tpu_custom_call.1
= control target key start
LH: loop header
LB: loop body
LE: loop exit
PB: predicated region body
PF: predicated region fallthrough
CT: control target
= control target key end

     0   :  { %7 = vsyncpa [#allocation4], 0  ;;  %s65_s0 = inlined_call_operand.<no memory space> [shape: f32[1], index: 0, kind: input, shape index: {}, may-alias: {0,1}]   ;;  %s66_s1 = inlined_call_operand.hbm [shape: f32[1], index: 1, kind: output, shape index: {}, may-alias: {0,1}]  }
   0x1   :  { %12 = sst [smem:[#allocation3]] %s65_s0  ;;  %s27_s10 = scalar_lea.hbm %s66_s1, 16 }
   0x2   :  { %p28_p0 = scmp.ne.s32.totalorder %s66_s1, %s27_s10  ;;  %p31_p1 = scmp.lt.u32.totalorder %s27_s10, %s66_s1 }
   0x4   :  { %p33_p2 = pnand %p31_p1, %p28_p0 }
   0x6   :  { %36 = shalt.err (!%p33_p2)
}
   0x7   :  { %s39_s15 = smov [#allocation3]  }
   0x8   :  { %20 = dma.smem_to_hbm %s39_s15, 16, %s66_s1, [#allocation4]  }
   0x9   :  { %37 = dma.done.wait [#allocation4], 16  }
   0xa   :  { %38 = vsyncadd [#allocation4], 4294967280 }
   0xb   :  { %24 = sfence }
   0xc   :  { %25 = vsyncpa [#allocation4], 1 }

</bundles_post_ra>
